<compile_context>
chip_gen: v6e
topology: v6e:2x2x1
jax: 0.10.0
libtpu: 0.0.40
codegen_flags: <defaults>
</compile_context>

<pallas_src>
import functools

import jax
import jax.numpy as jnp
from jax.experimental import pallas as pl
from jax.experimental.pallas import tpu as pltpu


def _round_up(x, m):
    return (x + m - 1) // m * m


def _detection_loss_kernel(pred_ref, targ_ref, out_ref, acc_ref, *,
                           heatmap_threshold, hw_valid, tile, needs_mask):
    s = pl.program_id(0)       # parallel split (megacore) index
    t_idx = pl.program_id(1)   # tile index along the spatial (HW) axis
    nt = pl.num_programs(1)

    @pl.when(t_idx == 0)
    def _init():
        acc_ref[...] = jnp.zeros_like(acc_ref)

    # Cast-on-load keeps all arithmetic in f32 (bf16 inputs would still halve
    # HBM traffic; v5e has no bf16 VPU/EUP paths so f32 compute is right).
    pred = pred_ref[...].astype(jnp.float32)   # [B, 7, TILE]
    targ = targ_ref[...].astype(jnp.float32)   # [B, 7, TILE]

    t_hm = targ[:, 0, :]                       # [B, TILE]
    p_hm = jax.nn.sigmoid(pred[:, 0, :])       # EUP sigmoid
    d_hm = t_hm - p_hm
    hm_contrib = d_hm * d_hm                   # [B, TILE]

    mask = (t_hm > heatmap_threshold).astype(jnp.float32)   # [B, TILE]

    if needs_mask:
        # Ragged last region: zero out contributions from padded lanes.
        start = (s * nt + t_idx) * tile
        pos = start + jax.lax.broadcasted_iota(jnp.int32, (1, tile), 1)
        lane_valid = pos < hw_valid                          # [1, TILE]
        hm_contrib = jnp.where(lane_valid, hm_contrib, 0.0)
        mask = jnp.where(lane_valid, mask, 0.0)

    weight = t_hm * mask                                     # [B, TILE]

    def weighted_contrib(c0):
        # Two lane-aligned channel residuals; no sublane (axis=1) reduction.
        r0 = targ[:, c0, :] - pred[:, c0, :]
        r1 = targ[:, c0 + 1, :] - pred[:, c0 + 1, :]
        return (r0 * r0 + r1 * r1) * weight                  # [B, TILE]

    # Element-wise VMEM accumulation: pure VPU adds per tile.
    acc_ref[0] += hm_contrib
    acc_ref[1] += weighted_contrib(1)   # offsets
    acc_ref[2] += weighted_contrib(3)   # sizes
    acc_ref[3] += weighted_contrib(5)   # headings
    acc_ref[4] += mask                  # count for M

    @pl.when(t_idx == nt - 1)
    def _finalize():
        s_hm = jnp.sum(acc_ref[0])
        s_off = jnp.sum(acc_ref[1])
        s_size = jnp.sum(acc_ref[2])
        s_head = jnp.sum(acc_ref[3])
        s_cnt = jnp.sum(acc_ref[4])
        lane = jax.lax.broadcasted_iota(jnp.int32, (1, 8, 128), 2)
        out_ref[...] = (jnp.where(lane == 0, s_hm, 0.0)
                        + jnp.where(lane == 1, s_off, 0.0)
                        + jnp.where(lane == 2, s_size, 0.0)
                        + jnp.where(lane == 3, s_head, 0.0)
                        + jnp.where(lane == 4, s_cnt, 0.0))


def detection_loss(predictions, targets, *, heatmap_loss_weight, offset_loss_weight,
                   size_loss_weight, heading_loss_weight, heatmap_threshold,
                   nsplit=2, max_tile=8192, vmem_budget_bytes=8 * 1024 * 1024):
    """predictions, targets: [B, 7, H, W] float32 (NCHW, matching the PyTorch module)."""
    B, C, H, W = predictions.shape
    assert C == 7
    HW = H * W

    # --- choose spatial tile: large enough for efficient double-buffered DMA,
    # small enough that 2 inputs x 2 pipeline buffers + the accumulator stay
    # well under the scoped-VMEM defaults (16 MiB v5e, 32 MiB v6e/v7x).
    bytes_per_lane = (2 * 2 * B * 8 * 4            # 2 inputs x 2 buffers (7 ch pads to 8 sublanes)
                      + 5 * _round_up(B, 8) * 4)   # VMEM accumulator
    tile_cap = max(128, (vmem_budget_bytes // bytes_per_lane) // 128 * 128)
    tile = min(max_tile, tile_cap, _round_up(pl.cdiv(HW, nsplit), 128))
    tile = max(tile, 128)

    num_tiles = pl.cdiv(HW, nsplit * tile)
    hw_pad = nsplit * num_tiles * tile

    pred_flat = predictions.reshape(B, C, HW)
    targ_flat = targets.reshape(B, C, HW)
    if hw_pad != HW:
        pad = hw_pad - HW
        pred_flat = jnp.pad(pred_flat, ((0, 0), (0, 0), (0, pad)))
        targ_flat = jnp.pad(targ_flat, ((0, 0), (0, 0), (0, pad)))

    kernel = functools.partial(
        _detection_loss_kernel,
        heatmap_threshold=float(heatmap_threshold),
        hw_valid=HW, tile=tile, needs_mask=(hw_pad != HW))

    in_spec = pl.BlockSpec((B, 7, tile), lambda s, t: (0, 0, s * num_tiles + t))
    out_spec = pl.BlockSpec((1, 8, 128), lambda s, t: (s, 0, 0))

    partials = pl.pallas_call(
        kernel,
        out_shape=jax.ShapeDtypeStruct((nsplit, 8, 128), jnp.float32),
        grid_spec=pltpu.PrefetchScalarGridSpec(
            num_scalar_prefetch=0,
            grid=(nsplit, num_tiles),
            in_specs=[in_spec, in_spec],
            out_specs=out_spec,
            scratch_shapes=[pltpu.VMEM((5, B, tile), jnp.float32)],
        ),
        compiler_params=pltpu.CompilerParams(
            dimension_semantics=("parallel", "arbitrary")),
        cost_estimate=pl.CostEstimate(
            flops=30 * B * HW,
            transcendentals=B * HW,
            bytes_accessed=2 * B * 7 * hw_pad * 4 + nsplit * 8 * 128 * 4),
    )(pred_flat, targ_flat)

    sums = jnp.sum(partials[:, 0, :5], axis=0)   # combine per-split partials

    heatmap_loss = sums[0] / jnp.float32(B * H * W)
    # NOTE: division by M matches the PyTorch reference (NaN/Inf if no element
    # of the ground-truth heatmap exceeds the threshold).
    M = sums[4]
    offset_loss = sums[1] / M
    size_loss = sums[2] / M
    heading_loss = sums[3] / M

    total_loss = (heatmap_loss * heatmap_loss_weight
                  + offset_loss * offset_loss_weight
                  + size_loss * size_loss_weight
                  + heading_loss * heading_loss_weight)
    return total_loss, dict(total_loss=total_loss,
                            heatmap_loss=heatmap_loss,
                            offset_loss=offset_loss,
                            size_loss=size_loss,
                            heading_loss=heading_loss)


def _reference_loss(predictions, targets, *, heatmap_loss_weight, offset_loss_weight,
                    size_loss_weight, heading_loss_weight, heatmap_threshold):
    """Pure-JAX reference reproducing the PyTorch semantics, for verification."""
    t_hm = targets[:, 0:1]
    p_hm = jax.nn.sigmoid(predictions[:, 0:1])
    heatmap_loss = jnp.mean((t_hm - p_hm) ** 2)

    def hw_mse(t, p):
        B, _, H, W = t.shape
        mse = jnp.sum((t - p) ** 2, axis=1)                       # [B,H,W]
        mask = (t_hm > heatmap_threshold).astype(jnp.float32)     # [B,1,H,W]
        M = jnp.sum(mask)
        return jnp.sum(mse * (t_hm * mask).reshape(B, H, W)) / M

    offset_loss = hw_mse(targets[:, 1:3], predictions[:, 1:3])
    size_loss = hw_mse(targets[:, 3:5], predictions[:, 3:5])
    heading_loss = hw_mse(targets[:, 5:7], predictions[:, 5:7])
    total = (heatmap_loss * heatmap_loss_weight + offset_loss * offset_loss_weight
             + size_loss * size_loss_weight + heading_loss * heading_loss_weight)
    return total


if __name__ == "__main__":
    cfg = dict(
        heatmap_loss_weight=100.0,
        offset_loss_weight=10.0,
        size_loss_weight=1.0,
        heading_loss_weight=1.0,
        heatmap_threshold=0.01,
    )

    key = jax.random.PRNGKey(0)

    def make_inputs(k, B, C, H, W):
        kp, kt = jax.random.split(k)
        preds = jax.random.normal(kp, (B, C, H, W), dtype=jnp.float32)
        targs = jax.random.normal(kt, (B, C, H, W), dtype=jnp.float32)
        # Make the target heatmap look like a heatmap (values in [0, 1]).
        targs = targs.at[:, 0:1].set(jax.nn.sigmoid(targs[:, 0:1]))
        return preds, targs

    # Case 1: small, lane-aligned spatial map (no padding path).
    preds, targs = make_inputs(key, 2, 7, 16, 16)
    total, meta = detection_loss(preds, targs, **cfg)
    total = jax.block_until_ready(total)
    ref_total = _reference_loss(preds, targs, **cfg)
    assert jnp.allclose(total, ref_total, rtol=1e-5, atol=1e-5), (total, ref_total)

    # Case 2: ragged spatial map (exercises padding + in-kernel lane masking).
    preds2, targs2 = make_inputs(jax.random.PRNGKey(1), 2, 7, 20, 20)
    total2, _ = detection_loss(preds2, targs2, **cfg)
    total2 = jax.block_until_ready(total2)
    ref_total2 = _reference_loss(preds2, targs2, **cfg)
    assert jnp.allclose(total2, ref_total2, rtol=1e-5, atol=1e-5), (total2, ref_total2)

    print("KERNEL_OK")
</pallas_src>

<mosaic_0001>
module attributes {stable_mosaic.version = 11 : i64} {
  func.func @_detection_loss_kernel(%arg0: i32, %arg1: i32, %arg2: memref<2x7x128xf32, #tpu.memory_space<vmem>>, %arg3: memref<2x7x128xf32, #tpu.memory_space<vmem>>, %arg4: memref<1x8x128xf32, #tpu.memory_space<vmem>>, %arg5: memref<5x2x128xf32, #tpu.memory_space<vmem>>) attributes {dimension_semantics = [#tpu.dimension_semantics<parallel>, #tpu.dimension_semantics<arbitrary>], iteration_bounds = array<i64: 2, 1>, scalar_prefetch = 0 : i64, scratch_operands = 1 : i64, tpu.core_type = #tpu.core_type<tc>, window_params = [{transform_indices = @transform_0, window_bounds = array<i64: 2, 7, 128>}, {transform_indices = @transform_1, window_bounds = array<i64: 2, 7, 128>}, {transform_indices = @transform_2, window_bounds = array<i64: 1, 8, 128>}]} {
    %c0_i32 = arith.constant 0 : i32
    %0 = arith.cmpi eq, %arg1, %c0_i32 : i32
    %1 = arith.extui %0 : i1 to i32
    %c0_i32_0 = arith.constant 0 : i32
    %2 = arith.cmpi ne, %1, %c0_i32_0 : i32
    scf.if %2 {
      %cst_35 = arith.constant 0.000000e+00 : f32
      %96 = vector.broadcast %cst_35 : f32 to vector<5x2x128xf32>
      %c0_36 = arith.constant 0 : index
      %c0_37 = arith.constant 0 : index
      %c0_38 = arith.constant 0 : index
      %97 = vector.load %arg5[%c0_36, %c0_37, %c0_38] : memref<5x2x128xf32, #tpu.memory_space<vmem>>, vector<5x2x128xf32>
      tpu.vector_store %arg5[%c0_36, %c0_37, %c0_38], %96 {strides = array<i32>} : memref<5x2x128xf32, #tpu.memory_space<vmem>>, vector<5x2x128xf32>,
    } else {
    }
    %c0 = arith.constant 0 : index
    %c0_1 = arith.constant 0 : index
    %c0_2 = arith.constant 0 : index
    %3 = vector.load %arg2[%c0, %c0_1, %c0_2] : memref<2x7x128xf32, #tpu.memory_space<vmem>>, vector<2x7x128xf32>
    %c0_3 = arith.constant 0 : index
    %c0_4 = arith.constant 0 : index
    %c0_5 = arith.constant 0 : index
    %4 = vector.load %arg3[%c0_3, %c0_4, %c0_5] : memref<2x7x128xf32, #tpu.memory_space<vmem>>, vector<2x7x128xf32>
    %5 = vector.extract_strided_slice %4 {offsets = [0, 0, 0], sizes = [2, 1, 128], strides = [1, 1, 1]} : vector<2x7x128xf32> to vector<2x1x128xf32>
    %6 = vector.shape_cast %5 : vector<2x1x128xf32> to vector<2x128xf32>
    %7 = vector.extract_strided_slice %3 {offsets = [0, 0, 0], sizes = [2, 1, 128], strides = [1, 1, 1]} : vector<2x7x128xf32> to vector<2x1x128xf32>
    %8 = vector.shape_cast %7 : vector<2x1x128xf32> to vector<2x128xf32>
    %9 = arith.negf %8 : vector<2x128xf32>
    %10 = math.exp %9 : vector<2x128xf32>
    %cst = arith.constant 1.000000e+00 : f32
    %11 = vector.broadcast %cst : f32 to vector<2x128xf32>
    %12 = arith.addf %11, %10 : vector<2x128xf32>
    %13 = arith.divf %11, %12 : vector<2x128xf32>
    %14 = arith.subf %6, %13 : vector<2x128xf32>
    %15 = arith.mulf %14, %14 : vector<2x128xf32>
    %cst_6 = arith.constant 0.00999999977 : f32
    %16 = vector.broadcast %cst_6 : f32 to vector<2x128xf32>
    %17 = arith.cmpf ogt, %6, %16 : vector<2x128xf32>
    %18 = arith.extui %17 : vector<2x128xi1> to vector<2x128xi32>
    %19 = arith.sitofp %18 : vector<2x128xi32> to vector<2x128xf32>
    %20 = arith.mulf %6, %19 : vector<2x128xf32>
    %c0_7 = arith.constant 0 : index
    %c0_8 = arith.constant 0 : index
    %c0_9 = arith.constant 0 : index
    %21 = vector.load %arg5[%c0_7, %c0_8, %c0_9] : memref<5x2x128xf32, #tpu.memory_space<vmem>>, vector<1x2x128xf32>
    %22 = vector.shape_cast %21 : vector<1x2x128xf32> to vector<2x128xf32>
    %23 = arith.addf %22, %15 : vector<2x128xf32>
    %c0_10 = arith.constant 0 : index
    %c0_11 = arith.constant 0 : index
    %c0_12 = arith.constant 0 : index
    %24 = vector.load %arg5[%c0_10, %c0_11, %c0_12] : memref<5x2x128xf32, #tpu.memory_space<vmem>>, vector<1x2x128xf32>
    %25 = vector.shape_cast %24 : vector<1x2x128xf32> to vector<2x128xf32>
    %26 = vector.shape_cast %23 : vector<2x128xf32> to vector<1x2x128xf32>
    tpu.vector_store %arg5[%c0_10, %c0_11, %c0_12], %26 {strides = array<i32>} : memref<5x2x128xf32, #tpu.memory_space<vmem>>, vector<1x2x128xf32>,
    %c1 = arith.constant 1 : index
    %c0_13 = arith.constant 0 : index
    %c0_14 = arith.constant 0 : index
    %27 = vector.load %arg5[%c1, %c0_13, %c0_14] : memref<5x2x128xf32, #tpu.memory_space<vmem>>, vector<1x2x128xf32>
    %28 = vector.shape_cast %27 : vector<1x2x128xf32> to vector<2x128xf32>
    %29 = vector.extract_strided_slice %4 {offsets = [0, 1, 0], sizes = [2, 1, 128], strides = [1, 1, 1]} : vector<2x7x128xf32> to vector<2x1x128xf32>
    %30 = vector.shape_cast %29 : vector<2x1x128xf32> to vector<2x128xf32>
    %31 = vector.extract_strided_slice %3 {offsets = [0, 1, 0], sizes = [2, 1, 128], strides = [1, 1, 1]} : vector<2x7x128xf32> to vector<2x1x128xf32>
    %32 = vector.shape_cast %31 : vector<2x1x128xf32> to vector<2x128xf32>
    %33 = arith.subf %30, %32 : vector<2x128xf32>
    %34 = vector.extract_strided_slice %4 {offsets = [0, 2, 0], sizes = [2, 1, 128], strides = [1, 1, 1]} : vector<2x7x128xf32> to vector<2x1x128xf32>
    %35 = vector.shape_cast %34 : vector<2x1x128xf32> to vector<2x128xf32>
    %36 = vector.extract_strided_slice %3 {offsets = [0, 2, 0], sizes = [2, 1, 128], strides = [1, 1, 1]} : vector<2x7x128xf32> to vector<2x1x128xf32>
    %37 = vector.shape_cast %36 : vector<2x1x128xf32> to vector<2x128xf32>
    %38 = arith.subf %35, %37 : vector<2x128xf32>
    %39 = arith.mulf %33, %33 : vector<2x128xf32>
    %40 = arith.mulf %38, %38 : vector<2x128xf32>
    %41 = arith.addf %39, %40 : vector<2x128xf32>
    %42 = arith.mulf %41, %20 : vector<2x128xf32>
    %43 = arith.addf %28, %42 : vector<2x128xf32>
    %c1_15 = arith.constant 1 : index
    %c0_16 = arith.constant 0 : index
    %c0_17 = arith.constant 0 : index
    %44 = vector.load %arg5[%c1_15, %c0_16, %c0_17] : memref<5x2x128xf32, #tpu.memory_space<vmem>>, vector<1x2x128xf32>
    %45 = vector.shape_cast %44 : vector<1x2x128xf32> to vector<2x128xf32>
    %46 = vector.shape_cast %43 : vector<2x128xf32> to vector<1x2x128xf32>
    tpu.vector_store %arg5[%c1_15, %c0_16, %c0_17], %46 {strides = array<i32>} : memref<5x2x128xf32, #tpu.memory_space<vmem>>, vector<1x2x128xf32>,
    %c2 = arith.constant 2 : index
    %c0_18 = arith.constant 0 : index
    %c0_19 = arith.constant 0 : index
    %47 = vector.load %arg5[%c2, %c0_18, %c0_19] : memref<5x2x128xf32, #tpu.memory_space<vmem>>, vector<1x2x128xf32>
    %48 = vector.shape_cast %47 : vector<1x2x128xf32> to vector<2x128xf32>
    %49 = vector.extract_strided_slice %4 {offsets = [0, 3, 0], sizes = [2, 1, 128], strides = [1, 1, 1]} : vector<2x7x128xf32> to vector<2x1x128xf32>
    %50 = vector.shape_cast %49 : vector<2x1x128xf32> to vector<2x128xf32>
    %51 = vector.extract_strided_slice %3 {offsets = [0, 3, 0], sizes = [2, 1, 128], strides = [1, 1, 1]} : vector<2x7x128xf32> to vector<2x1x128xf32>
    %52 = vector.shape_cast %51 : vector<2x1x128xf32> to vector<2x128xf32>
    %53 = arith.subf %50, %52 : vector<2x128xf32>
    %54 = vector.extract_strided_slice %4 {offsets = [0, 4, 0], sizes = [2, 1, 128], strides = [1, 1, 1]} : vector<2x7x128xf32> to vector<2x1x128xf32>
    %55 = vector.shape_cast %54 : vector<2x1x128xf32> to vector<2x128xf32>
    %56 = vector.extract_strided_slice %3 {offsets = [0, 4, 0], sizes = [2, 1, 128], strides = [1, 1, 1]} : vector<2x7x128xf32> to vector<2x1x128xf32>
    %57 = vector.shape_cast %56 : vector<2x1x128xf32> to vector<2x128xf32>
    %58 = arith.subf %55, %57 : vector<2x128xf32>
    %59 = arith.mulf %53, %53 : vector<2x128xf32>
    %60 = arith.mulf %58, %58 : vector<2x128xf32>
    %61 = arith.addf %59, %60 : vector<2x128xf32>
    %62 = arith.mulf %61, %20 : vector<2x128xf32>
    %63 = arith.addf %48, %62 : vector<2x128xf32>
    %c2_20 = arith.constant 2 : index
    %c0_21 = arith.constant 0 : index
    %c0_22 = arith.constant 0 : index
    %64 = vector.load %arg5[%c2_20, %c0_21, %c0_22] : memref<5x2x128xf32, #tpu.memory_space<vmem>>, vector<1x2x128xf32>
    %65 = vector.shape_cast %64 : vector<1x2x128xf32> to vector<2x128xf32>
    %66 = vector.shape_cast %63 : vector<2x128xf32> to vector<1x2x128xf32>
    tpu.vector_store %arg5[%c2_20, %c0_21, %c0_22], %66 {strides = array<i32>} : memref<5x2x128xf32, #tpu.memory_space<vmem>>, vector<1x2x128xf32>,
    %c3 = arith.constant 3 : index
    %c0_23 = arith.constant 0 : index
    %c0_24 = arith.constant 0 : index
    %67 = vector.load %arg5[%c3, %c0_23, %c0_24] : memref<5x2x128xf32, #tpu.memory_space<vmem>>, vector<1x2x128xf32>
    %68 = vector.shape_cast %67 : vector<1x2x128xf32> to vector<2x128xf32>
    %69 = vector.extract_strided_slice %4 {offsets = [0, 5, 0], sizes = [2, 1, 128], strides = [1, 1, 1]} : vector<2x7x128xf32> to vector<2x1x128xf32>
    %70 = vector.shape_cast %69 : vector<2x1x128xf32> to vector<2x128xf32>
    %71 = vector.extract_strided_slice %3 {offsets = [0, 5, 0], sizes = [2, 1, 128], strides = [1, 1, 1]} : vector<2x7x128xf32> to vector<2x1x128xf32>
    %72 = vector.shape_cast %71 : vector<2x1x128xf32> to vector<2x128xf32>
    %73 = arith.subf %70, %72 : vector<2x128xf32>
    %74 = vector.extract_strided_slice %4 {offsets = [0, 6, 0], sizes = [2, 1, 128], strides = [1, 1, 1]} : vector<2x7x128xf32> to vector<2x1x128xf32>
    %75 = vector.shape_cast %74 : vector<2x1x128xf32> to vector<2x128xf32>
    %76 = vector.extract_strided_slice %3 {offsets = [0, 6, 0], sizes = [2, 1, 128], strides = [1, 1, 1]} : vector<2x7x128xf32> to vector<2x1x128xf32>
    %77 = vector.shape_cast %76 : vector<2x1x128xf32> to vector<2x128xf32>
    %78 = arith.subf %75, %77 : vector<2x128xf32>
    %79 = arith.mulf %73, %73 : vector<2x128xf32>
    %80 = arith.mulf %78, %78 : vector<2x128xf32>
    %81 = arith.addf %79, %80 : vector<2x128xf32>
    %82 = arith.mulf %81, %20 : vector<2x128xf32>
    %83 = arith.addf %68, %82 : vector<2x128xf32>
    %c3_25 = arith.constant 3 : index
    %c0_26 = arith.constant 0 : index
    %c0_27 = arith.constant 0 : index
    %84 = vector.load %arg5[%c3_25, %c0_26, %c0_27] : memref<5x2x128xf32, #tpu.memory_space<vmem>>, vector<1x2x128xf32>
    %85 = vector.shape_cast %84 : vector<1x2x128xf32> to vector<2x128xf32>
    %86 = vector.shape_cast %83 : vector<2x128xf32> to vector<1x2x128xf32>
    tpu.vector_store %arg5[%c3_25, %c0_26, %c0_27], %86 {strides = array<i32>} : memref<5x2x128xf32, #tpu.memory_space<vmem>>, vector<1x2x128xf32>,
    %c4 = arith.constant 4 : index
    %c0_28 = arith.constant 0 : index
    %c0_29 = arith.constant 0 : index
    %87 = vector.load %arg5[%c4, %c0_28, %c0_29] : memref<5x2x128xf32, #tpu.memory_space<vmem>>, vector<1x2x128xf32>
    %88 = vector.shape_cast %87 : vector<1x2x128xf32> to vector<2x128xf32>
    %89 = arith.addf %88, %19 : vector<2x128xf32>
    %c4_30 = arith.constant 4 : index
    %c0_31 = arith.constant 0 : index
    %c0_32 = arith.constant 0 : index
    %90 = vector.load %arg5[%c4_30, %c0_31, %c0_32] : memref<5x2x128xf32, #tpu.memory_space<vmem>>, vector<1x2x128xf32>
    %91 = vector.shape_cast %90 : vector<1x2x128xf32> to vector<2x128xf32>
    %92 = vector.shape_cast %89 : vector<2x128xf32> to vector<1x2x128xf32>
    tpu.vector_store %arg5[%c4_30, %c0_31, %c0_32], %92 {strides = array<i32>} : memref<5x2x128xf32, #tpu.memory_space<vmem>>, vector<1x2x128xf32>,
    %c0_i32_33 = arith.constant 0 : i32
    %93 = arith.cmpi eq, %arg1, %c0_i32_33 : i32
    %94 = arith.extui %93 : i1 to i32
    %c0_i32_34 = arith.constant 0 : i32
    %95 = arith.cmpi ne, %94, %c0_i32_34 : i32
    scf.if %95 {
      %c0_35 = arith.constant 0 : index
      %c0_36 = arith.constant 0 : index
      %c0_37 = arith.constant 0 : index
      %96 = vector.load %arg5[%c0_35, %c0_36, %c0_37] : memref<5x2x128xf32, #tpu.memory_space<vmem>>, vector<1x2x128xf32>
      %97 = vector.shape_cast %96 : vector<1x2x128xf32> to vector<2x128xf32>
      %98 = vector.shape_cast %97 : vector<2x128xf32> to vector<1x2x128xf32>
      %cst_38 = arith.constant dense<0.000000e+00> : vector<1xf32>
      %99 = vector.multi_reduction <add>, %98, %cst_38 [1, 2] : vector<1x2x128xf32> to vector<1xf32>
      %100 = vector.shape_cast %99 : vector<1xf32> to vector<1x1x1xf32>
      %101 = vector.extract %100[0, 0, 0] : f32 from vector<1x1x1xf32>
      %c1_39 = arith.constant 1 : index
      %c0_40 = arith.constant 0 : index
      %c0_41 = arith.constant 0 : index
      %102 = vector.load %arg5[%c1_39, %c0_40, %c0_41] : memref<5x2x128xf32, #tpu.memory_space<vmem>>, vector<1x2x128xf32>
      %103 = vector.shape_cast %102 : vector<1x2x128xf32> to vector<2x128xf32>
      %104 = vector.shape_cast %103 : vector<2x128xf32> to vector<1x2x128xf32>
      %cst_42 = arith.constant dense<0.000000e+00> : vector<1xf32>
      %105 = vector.multi_reduction <add>, %104, %cst_42 [1, 2] : vector<1x2x128xf32> to vector<1xf32>
      %106 = vector.shape_cast %105 : vector<1xf32> to vector<1x1x1xf32>
      %107 = vector.extract %106[0, 0, 0] : f32 from vector<1x1x1xf32>
      %c2_43 = arith.constant 2 : index
      %c0_44 = arith.constant 0 : index
      %c0_45 = arith.constant 0 : index
      %108 = vector.load %arg5[%c2_43, %c0_44, %c0_45] : memref<5x2x128xf32, #tpu.memory_space<vmem>>, vector<1x2x128xf32>
      %109 = vector.shape_cast %108 : vector<1x2x128xf32> to vector<2x128xf32>
      %110 = vector.shape_cast %109 : vector<2x128xf32> to vector<1x2x128xf32>
      %cst_46 = arith.constant dense<0.000000e+00> : vector<1xf32>
      %111 = vector.multi_reduction <add>, %110, %cst_46 [1, 2] : vector<1x2x128xf32> to vector<1xf32>
      %112 = vector.shape_cast %111 : vector<1xf32> to vector<1x1x1xf32>
      %113 = vector.extract %112[0, 0, 0] : f32 from vector<1x1x1xf32>
      %c3_47 = arith.constant 3 : index
      %c0_48 = arith.constant 0 : index
      %c0_49 = arith.constant 0 : index
      %114 = vector.load %arg5[%c3_47, %c0_48, %c0_49] : memref<5x2x128xf32, #tpu.memory_space<vmem>>, vector<1x2x128xf32>
      %115 = vector.shape_cast %114 : vector<1x2x128xf32> to vector<2x128xf32>
      %116 = vector.shape_cast %115 : vector<2x128xf32> to vector<1x2x128xf32>
      %cst_50 = arith.constant dense<0.000000e+00> : vector<1xf32>
      %117 = vector.multi_reduction <add>, %116, %cst_50 [1, 2] : vector<1x2x128xf32> to vector<1xf32>
      %118 = vector.shape_cast %117 : vector<1xf32> to vector<1x1x1xf32>
      %119 = vector.extract %118[0, 0, 0] : f32 from vector<1x1x1xf32>
      %c4_51 = arith.constant 4 : index
      %c0_52 = arith.constant 0 : index
      %c0_53 = arith.constant 0 : index
      %120 = vector.load %arg5[%c4_51, %c0_52, %c0_53] : memref<5x2x128xf32, #tpu.memory_space<vmem>>, vector<1x2x128xf32>
      %121 = vector.shape_cast %120 : vector<1x2x128xf32> to vector<2x128xf32>
      %122 = vector.shape_cast %121 : vector<2x128xf32> to vector<1x2x128xf32>
      %cst_54 = arith.constant dense<0.000000e+00> : vector<1xf32>
      %123 = vector.multi_reduction <add>, %122, %cst_54 [1, 2] : vector<1x2x128xf32> to vector<1xf32>
      %124 = vector.shape_cast %123 : vector<1xf32> to vector<1x1x1xf32>
      %125 = vector.extract %124[0, 0, 0] : f32 from vector<1x1x1xf32>
      %126 = tpu.iota {dimensions = array<i32: 2>} : vector<1x8x128xi32>
      %c0_i32_55 = arith.constant 0 : i32
      %127 = vector.broadcast %c0_i32_55 : i32 to vector<1x8x128xi32>
      %128 = arith.cmpi eq, %126, %127 : vector<1x8x128xi32>
      %cst_56 = arith.constant 0.000000e+00 : f32
      %129 = vector.broadcast %101 : f32 to vector<1x8x128xf32>
      %130 = vector.broadcast %cst_56 : f32 to vector<1x8x128xf32>
      %131 = arith.select %128, %129, %130 : vector<1x8x128xi1>, vector<1x8x128xf32>
      %c1_i32 = arith.constant 1 : i32
      %132 = vector.broadcast %c1_i32 : i32 to vector<1x8x128xi32>
      %133 = arith.cmpi eq, %126, %132 : vector<1x8x128xi32>
      %cst_57 = arith.constant 0.000000e+00 : f32
      %134 = vector.broadcast %107 : f32 to vector<1x8x128xf32>
      %135 = vector.broadcast %cst_57 : f32 to vector<1x8x128xf32>
      %136 = arith.select %133, %134, %135 : vector<1x8x128xi1>, vector<1x8x128xf32>
      %137 = arith.addf %131, %136 : vector<1x8x128xf32>
      %c2_i32 = arith.constant 2 : i32
      %138 = vector.broadcast %c2_i32 : i32 to vector<1x8x128xi32>
      %139 = arith.cmpi eq, %126, %138 : vector<1x8x128xi32>
      %cst_58 = arith.constant 0.000000e+00 : f32
      %140 = vector.broadcast %113 : f32 to vector<1x8x128xf32>
      %141 = vector.broadcast %cst_58 : f32 to vector<1x8x128xf32>
      %142 = arith.select %139, %140, %141 : vector<1x8x128xi1>, vector<1x8x128xf32>
      %143 = arith.addf %137, %142 : vector<1x8x128xf32>
      %c3_i32 = arith.constant 3 : i32
      %144 = vector.broadcast %c3_i32 : i32 to vector<1x8x128xi32>
      %145 = arith.cmpi eq, %126, %144 : vector<1x8x128xi32>
      %cst_59 = arith.constant 0.000000e+00 : f32
      %146 = vector.broadcast %119 : f32 to vector<1x8x128xf32>
      %147 = vector.broadcast %cst_59 : f32 to vector<1x8x128xf32>
      %148 = arith.select %145, %146, %147 : vector<1x8x128xi1>, vector<1x8x128xf32>
      %149 = arith.addf %143, %148 : vector<1x8x128xf32>
      %c4_i32 = arith.constant 4 : i32
      %150 = vector.broadcast %c4_i32 : i32 to vector<1x8x128xi32>
      %151 = arith.cmpi eq, %126, %150 : vector<1x8x128xi32>
      %cst_60 = arith.constant 0.000000e+00 : f32
      %152 = vector.broadcast %125 : f32 to vector<1x8x128xf32>
      %153 = vector.broadcast %cst_60 : f32 to vector<1x8x128xf32>
      %154 = arith.select %151, %152, %153 : vector<1x8x128xi1>, vector<1x8x128xf32>
      %155 = arith.addf %149, %154 : vector<1x8x128xf32>
      %c0_61 = arith.constant 0 : index
      %c0_62 = arith.constant 0 : index
      %c0_63 = arith.constant 0 : index
      %156 = vector.load %arg4[%c0_61, %c0_62, %c0_63] : memref<1x8x128xf32, #tpu.memory_space<vmem>>, vector<1x8x128xf32>
      tpu.vector_store %arg4[%c0_61, %c0_62, %c0_63], %155 {strides = array<i32>} : memref<1x8x128xf32, #tpu.memory_space<vmem>>, vector<1x8x128xf32>,
    } else {
    }
    return
  }
  func.func @transform_0(%arg0: i32, %arg1: i32) -> (i32, i32, i32) {
    %c1_i32 = arith.constant 1 : i32
    %0 = arith.muli %arg0, %c1_i32 : i32
    %1 = arith.addi %0, %arg1 : i32
    %c0_i32 = arith.constant 0 : i32
    %c0_i32_0 = arith.constant 0 : i32
    %c0_i32_1 = arith.constant 0 : i32
    return %c0_i32, %c0_i32_0, %1 : i32, i32, i32
  }
  func.func @transform_1(%arg0: i32, %arg1: i32) -> (i32, i32, i32) {
    %c1_i32 = arith.constant 1 : i32
    %0 = arith.muli %arg0, %c1_i32 : i32
    %1 = arith.addi %0, %arg1 : i32
    %c0_i32 = arith.constant 0 : i32
    %c0_i32_0 = arith.constant 0 : i32
    %c0_i32_1 = arith.constant 0 : i32
    return %c0_i32, %c0_i32_0, %1 : i32, i32, i32
  }
  func.func @transform_2(%arg0: i32, %arg1: i32) -> (i32, i32, i32) {
    %c0_i32 = arith.constant 0 : i32
    %c0_i32_0 = arith.constant 0 : i32
    %c0_i32_1 = arith.constant 0 : i32
    return %arg0, %c0_i32, %c0_i32_0 : i32, i32, i32
  }
}

</mosaic_0001>

<bundles_post_ra>
// kernel: tpu_custom_call.1
= control target key start
LH: loop header
LB: loop body
LE: loop exit
PB: predicated region body
PF: predicated region fallthrough
CT: control target
= control target key end

     0   :  { %7 = vsyncpa [#allocation6], 0  ;;  %s897_s0 = inlined_call_operand.vmem [shape: f32[2,7,256], index: 0, kind: input, shape index: {}]   ;;  %s898_s1 = inlined_call_operand.vmem [shape: f32[2,7,256], index: 1, kind: input, shape index: {}]   ;;  %s899_s2 = inlined_call_operand.hbm [shape: f32[2,8,128], index: 2, kind: output, shape index: {}]  }
   0x1   :  { %9 = vsyncpa [#allocation6 + $0x1], 0  ;;  %s753_s9 = smov 0   ;;  %s755_s10 = smov 0  }
   0x2   :  { %s757_s11 = smov 0   ;;  %s759_s12 = smov 0  }
   0x3   :  { %s761_s13 = smov 0   ;;  %s763_s14 = smov 0  }
   0x4 LB: > { %s564_s15 = sadd.s32 4294967295, %s734_s14   ;;  %s565_s16 = sadd.s32 4294967294, %s734_s14   ;;  %s734_s14 = sphi %s763_s14, %s15_s14   ;;  %s730_s13 = sphi %s761_s13, %s909_s13   ;;  %s726_s12 = sphi %s759_s12, %s908_s12   ;;  %s722_s11 = sphi %s757_s11, %s907_s11   ;;  %s718_s10 = sphi %s755_s10, %s906_s10   ;;  %s714_s9 = sphi %s753_s9, %s905_s9  }
   0x5   : > { %s27_s17 = sadd.s32 1, %s730_s13  ;;  %s36_s18 = sadd.s32 1, %s722_s11 }
   0x6   : > { %p29_p0 = scmp.ge.s32.totalorder %s27_s17, 2  ;;  %p43_p1 = scmp.ne.s32.totalorder %s722_s11, %s718_s10 }
   0x7   : > { %p44_p2 = scmp.eq.s32.totalorder %s734_s14, 0  ;;  %p101_p3 = scmp.eq.s32.totalorder %s564_s15, 1 }
   0x8   : > { %s911_s17 = smov (%p29_p0, %s27_s17), 0  ;;  %p106_p6 = scmp.ne.s32.totalorder %s718_s10, %s714_s9 }
   0x9   : > { %p792_p4 = por %p44_p2, %p43_p1  ;;  %p796_p5 = por %p101_p3, %p43_p1 }
   0xa   : > { %s33_s21 = ssub.s32 %s730_s13, %s911_s17  ;;  %p107_p8 = scmp.eq.s32.totalorder %s565_s16, 1 }
   0xb   : > { %p34_p7 = scmp.eq.s32.totalorder %s33_s21, 0  ;;  %p900_p10 = scmp.ge.s32.totalorder %s734_s14, 2 }
   0xc   : > { %p807_p9 = por %p107_p8, %p106_p6 }
   0xd   : > { %s805_s22 = scalar_select %p34_p7, %s722_s11, %s36_s18  }
   0xe   : > { %123 = sbr.rel (%p900_p10) target bundleno = 29 (0x1d), region = 16 }
  0x13   : > { %126 = sbr.rel (!%p792_p4) target bundleno = 24 (0x18), region = 20  ;;  %s128_s24 = sand.u32 (%p792_p4), 1, %s722_s11  }
  0x14   : > { %s569_s25 = sshll.u32 (%p792_p4), %s730_s13, 3  ;;  %s568_s26 = sshll.u32 (%p792_p4), %s128_s24, 4 }
  0x15   : > { %s133_s29 = scalar_lea.vmem (%p792_p4), %s897_s0, %s569_s25  ;;  %s130_s30 = scalar_lea.vmem (%p792_p4), [#allocation3], %s568_s26 }
  0x16   : > { %v164_v0 = vld [vmem:[%s133_s29] sm:$0xff] (%p792_p4)  ;;  %v166_v1 = vld [vmem:[%s133_s29 + $0x10] sm:$0xff] (%p792_p4) }
  0x17   : > { %165 = vst [vmem:[%s130_s30] sm:$0xff] (%p792_p4), %v164_v0  ;;  %167 = vst [vmem:[%s130_s30 + $0x8] sm:$0xff] (%p792_p4), %v166_v1 }
  0x18 PF: > { %173 = sbr.rel (!%p792_p4) target bundleno = 29 (0x1d), region = 58  ;;  %s175_s3 = sand.u32 (%p792_p4), 1, %s722_s11  }
  0x19   : > { %s571_s4 = sshll.u32 (%p792_p4), %s730_s13, 3  ;;  %s570_s5 = sshll.u32 (%p792_p4), %s175_s3, 4 }
  0x1a   : > { %s180_s8 = scalar_lea.vmem (%p792_p4), %s898_s1, %s571_s4  ;;  %s177_s15 = scalar_lea.vmem (%p792_p4), [#allocation4], %s570_s5 }
  0x1b   : > { %v211_v2 = vld [vmem:[%s180_s8] sm:$0xff] (%p792_p4)  ;;  %v213_v3 = vld [vmem:[%s180_s8 + $0x10] sm:$0xff] (%p792_p4) }
  0x1c   : > { %212 = vst [vmem:[%s177_s15] sm:$0xff] (%p792_p4), %v211_v2  ;;  %214 = vst [vmem:[%s177_s15 + $0x8] sm:$0xff] (%p792_p4), %v213_v3 }
  0x1d PF: > { %p572_p11 = scmp.ge.s32.totalorder %s734_s14, 1  ;;  %p219_p12 = scmp.lt.s32.totalorder %s734_s14, 3 }
  0x1f   : > { %p220_p13 = pnand %p572_p11, %p219_p12 }
  0x20   : > { %s831_s16 = sand.u32 (!%p220_p13), 1, %s718_s10   ;;  %s581_s30 = sshll.u32 (!%p220_p13), %s726_s12, 7 }
  0x21   : > { %223 = sbr.rel (%p220_p13) target bundleno = 318 (0x13e), region = 96  ;;  %s573_s18 = sshll.u32 (!%p220_p13), %s831_s16, 4 }
  0x22   : > { %s228_s19 = scalar_lea.vmem (!%p220_p13), [#allocation3], %s573_s18  ;;  %s235_s21 = scalar_lea.vmem (!%p220_p13), [#allocation4], %s573_s18 }
  0x23   : > { %s575_s26 = sshll.u32 (!%p220_p13), %s831_s16, 3  ;;  %s469_s7 = scalar_lea.hbm (!%p220_p13), %s899_s2, %s581_s30 }
  0x24   : > { %s257_s3 = scalar_lea.vmem (!%p220_p13), [#allocation5], %s575_s26  ;;  %s458_s8 = scalar_lea.sflag (!%p220_p13), [#allocation6], %s831_s16 }
  0x25   : > { %s471_s4 = sshll.u32 (!%p220_p13), %s257_s3, 4  ;;  %s737_s18 = smov (!%p220_p13), [#allocation5]   ;;  %s472_s4 = int_to_ptr.vmem [resolvable:$true] %s471_s4 }
  0x26   : > { %v736_v4 = vmov 0.0   ;;  %v269_v5 = vld [vmem:[%s228_s19] sm:$0x7f]  ;;  %v270_v6 = vld [vmem:[%s228_s19 + $0x8] sm:$0x7f]  ;;  %vm301_vm2 = vcmask 1041409  }
  0x27   : > { %266 = vst [vmem:[#allocation2 + $0x4] sm:$0x3] %v736_v4  ;;  %264 = vst [vmem:[#allocation2] sm:$0x3] %v736_v4  ;;  %v834_v7 = vld [vmem:[%s235_s21] sm:$0x7f] }
  0x28   : > { %265 = vst [vmem:[#allocation2 + $0x2] sm:$0x3] %v736_v4  ;;  %267 = vst [vmem:[#allocation2 + $0x6] sm:$0x3] %v736_v4  ;;  %v836_v8 = vld [vmem:[%s235_s21 + $0x8] sm:$0x7f]  ;;  %v308_v10 = vsub.f32 %v834_v7, %v269_v5 }
  0x29   : > { %268 = vst [vmem:[#allocation2 + $0x8] sm:$0x3] %v736_v4  ;;  %v577_v9 = vmul.f32 -1.442695, %v270_v6  ;;  %vm289_vm0 = vcmp.gt.f32.partialorder %v834_v7, 0.01  ;;  %v309_v12 = vsub.f32 %v836_v8, %v270_v6 }
  0x2a   : > { %vm290_vm1 = vcmp.gt.f32.partialorder %v836_v8, 0.01  ;;  %v578_v11 = vsel %vm289_vm0, 1.0, %v736_v4  ;;  %v576_v13 = vmul.f32 -1.442695, %v269_v5  ;;  %v310_v16 = vmul.f32 %v308_v10, %v308_v10  ;;  %s658_s15 = scalar_lea.vmem %s472_s4, 128 }
  0x2b   : > { %650 = vpow2.f32 %v577_v9  ;;  %v579_v14 = vsel %vm290_vm1, 1.0, %v736_v4  ;;  %v295_v15 = vmul.f32 %v578_v11, %v834_v7  ;;  %v311_v18 = vmul.f32 %v309_v12, %v309_v12  ;;  %p659_p0 = scmp.ne.s32.totalorder %s472_s4, %s658_s15  ;;  %s662_s19 = sshll.u32 %s737_s18, 4  ;;  %s663_s19 = int_to_ptr.vmem [resolvable:$false] %s662_s19 }
  0x2c   : > { %v296_v17 = vmul.f32 %v579_v14, %v836_v8  ;;  %652 = vpow2.f32 %v576_v13  ;;  %v371_v19 = vrot.slane %v579_v14, 7  ;;  %v314_v20 = vrot.slane %v310_v16, 1  ;;  %s664_s12 = scalar_lea.vmem %s663_s19, 256  ;;  %p665_p3 = scmp.lt.s32.totalorder %s472_s4, %s663_s19 }
  0x2d   : > { %v337_v21 = vrot.slane %v295_v15, 5  ;;  %v315_v22 = vrot.slane %v311_v18, 1  ;;  %v353_v24 = vrot.slane %v295_v15, 3  ;;  %v322_v27 = vrot.slane %v295_v15, 7  ;;  %p660_p1 = pnand %p659_p0, %p796_p5  ;;  %p666_p4 = scmp.lt.s32.totalorder %s664_s12, %s658_s15 }
  0x2e   : > { %v338_v23 = vrot.slane %v296_v17, 5  ;;  %v354_v25 = vrot.slane %v296_v17, 3  ;;  %v318_v26 = vadd.f32 %v314_v20, %v310_v16  ;;  %v323_v28 = vrot.slane %v296_v17, 7  ;;  %v336_v43 = vld [vmem:[#allocation2 + $0x4] sm:$0x3] }
  0x2f   : > { %v372_v30 = vsel %vm301_vm2, %v371_v19, %v578_v11  ;;  %v319_v31 = vadd.f32 %v315_v22, %v311_v18  ;;  %v307_v41 = vld [vmem:[#allocation2 + $0x2] sm:$0x3]  ;;  %v352_v45 = vld [vmem:[#allocation2 + $0x6] sm:$0x3]  ;;  %vm380_vm3 = vcmask 1041408   ;;  %p661_p2 = pneg %p660_p1  ;;  %p667_p6 = por %p666_p4, %p665_p3 }
  0x30   : > { %v368_v29 = vld [vmem:[#allocation2 + $0x8] sm:$0x3]  ;;  %v341_v33 = vmul.f32 %v337_v21, %v318_v26  ;;  %v357_v34 = vmul.f32 %v353_v24, %v318_v26  ;;  %v326_v35 = vmul.f32 %v322_v27, %v318_v26  ;;  %v297_v3 = vld [vmem:[#allocation2] sm:$0x3] }
  0x31   : > { %v374_v32 = vadd.f32 %v372_v30, %v368_v29  ;;  %v342_v36 = vmul.f32 %v338_v23, %v319_v31  ;;  %v358_v37 = vmul.f32 %v354_v25, %v319_v31  ;;  %v327_v38 = vmul.f32 %v323_v28, %v319_v31  ;;  %p668_p7 = pnand %p667_p6, %p661_p2 }
  0x32   : > { %v345_v39 = vrot.slane %v341_v33, 3  ;;  %v361_v40 = vrot.slane %v357_v34, 5  ;;  %v330_v42 = vrot.slane %v326_v35, 1 }
  0x33   : > { %375 = vst [vmem:[#allocation2 + $0x8] sm:$0x3] %v374_v32  ;;  %v346_v44 = vrot.slane %v342_v36, 2  ;;  %v362_v46 = vrot.slane %v358_v37, 4 }
  0x34   : > { %v331_v47 = vsel %vm301_vm2, %v327_v38, %v330_v42 }
  0x35   : > { %v347_v48 = vsel %vm301_vm2, %v346_v44, %v345_v39  ;;  %v363_v49 = vsel %vm301_vm2, %v362_v46, %v361_v40  ;;  %v333_v50 = vadd.f32 %v331_v47, %v307_v41 }
  0x36   : > { %v349_v51 = vadd.f32 %v347_v48, %v336_v43  ;;  %v365_v52 = vadd.f32 %v363_v49, %v352_v45  ;;  %v435_v48 = vlaneseq }
  0x37   : > { %334 = vst [vmem:[#allocation2 + $0x2] sm:$0x3] %v333_v50 }
  0x38   : > { %v651_v53 = vpop.eup %650  ;;  %350 = vst [vmem:[#allocation2 + $0x4] sm:$0x3] %v349_v51  ;;  %366 = vst [vmem:[#allocation2 + $0x6] sm:$0x3] %v365_v52  ;;  %v436_v49 = vand.u32 127, %v435_v48 }
  0x39   : > { %v653_v54 = vpop.eup %652  ;;  %v280_v55 = vadd.f32 1.0, %v651_v53 }
  0x3a   : > { %v279_v56 = vadd.f32 1.0, %v653_v54  ;;  %v424_v13 = vld [vmem:[#allocation2 + $0x8] sm:$0x3]  ;;  %vm437_vm4 = vcmp.eq.s32.totalorder %v436_v49, 0  ;;  %vm440_vm5 = vcmp.eq.s32.totalorder %v436_v49, 1  ;;  %vm444_vm6 = vcmp.eq.s32.totalorder %v436_v49, 2 }
  0x3b   : > { %654 = vrcp.f32 %v280_v55  ;;  %vm448_vm7 = vcmp.eq.s32.totalorder %v436_v49, 3  ;;  %vm452_vm8 = vcmp.eq.s32.totalorder %v436_v49, 4 }
  0x3c   : > { %656 = vrcp.f32 %v279_v56 }
  0x3e   : > { %v391_v10 = vld [vmem:[#allocation2 + $0x2] sm:$0x3] }
  0x3f   : > { %v402_v57 = vld [vmem:[#allocation2 + $0x4] sm:$0x3]  ;;  %v413_v58 = vld [vmem:[#allocation2 + $0x6] sm:$0x3]  ;;  %v392_v12 = vsel %vm380_vm3, %v391_v10, 0.0 }
  0x40   : > { %v403_v59 = vsel %vm380_vm3, %v402_v57, 0.0  ;;  %v414_v60 = vsel %vm380_vm3, %v413_v58, 0.0 }
  0x41   : > { %404 = vadd.xlane.f32.xlu1 %v403_v59 }
  0x45   : > { %415 = vadd.xlane.f32.xlu1 %v414_v60 }
  0x48   : > { %v655_v61 = vpop.eup %654 }
  0x49   : > { %v657_v62 = vpop.eup %656  ;;  %v286_v63 = vsub.f32 %v836_v8, %v655_v61  ;;  %v425_v8 = vsel %vm380_vm3, %v424_v13, 0.0 }
  0x4a   : > { %v285_v0 = vsub.f32 %v834_v7, %v657_v62 }
  0x4b   : > { %v288_v1 = vmul.f32 %v286_v63, %v286_v63 }
  0x4c   : > { %v287_v2 = vmul.f32 %v285_v0, %v285_v0 }
  0x4d   : > { %v300_v4 = vrot.slane %v288_v1, 7 }
  0x4f   : > { %v302_v5 = vsel %vm301_vm2, %v300_v4, %v287_v2 }
  0x50   : > { %v304_v6 = vadd.f32 %v302_v5, %v297_v3 }
  0x52   : > { %305 = vst [vmem:[#allocation2] sm:$0x3] %v304_v6 }
  0x59   : > { %v379_v9 = vld [vmem:[#allocation2] sm:$0x3] }
  0x5a   : > { %v381_v11 = vsel %vm380_vm3, %v379_v9, 0.0 }
  0x5b   : > { %382 = vadd.xlane.f32.xlu0 %v381_v11 }
  0x5f   : > { %393 = vadd.xlane.f32.xlu0 %v392_v12 }
  0x63   : > { %426 = vadd.xlane.f32.xlu0 %v425_v8 }
  0xca   : > { %v405_v7 = vpop.xlane.xlu1 %404 }
  0xcb   : > { %v406_v15 = vrot.slane %v405_v7, 4 }
  0xcd   : > { %v407_v17 = vadd.f32 %v406_v15, %v405_v7 }
  0xce   : > { %v416_v14 = vpop.xlane.xlu1 %415 }
  0xcf   : > { %v417_v16 = vrot.slane %v416_v14, 4  ;;  %v408_v22 = vrot.slane %v407_v17, 2 }
  0xd1   : > { %v418_v20 = vadd.f32 %v417_v16, %v416_v14  ;;  %v409_v30 = vadd.f32 %v408_v22, %v407_v17 }
  0xd3   : > { %v419_v25 = vrot.slane %v418_v20, 2  ;;  %v410_v38 = vrot.slane %v409_v30, 1 }
  0xd5   : > { %v420_v31 = vadd.f32 %v419_v25, %v418_v20  ;;  %v411_v44 = vadd.f32 %v410_v38, %v409_v30 }
  0xd7   : > { %v421_v41 = vrot.slane %v420_v31, 1 }
  0xd9   : > { %v422_v45 = vadd.f32 %v421_v41, %v420_v31 }
  0xe4   : > { %v383_v18 = vpop.xlane.xlu0 %382 }
  0xe5   : > { %v384_v19 = vrot.slane %v383_v18, 4 }
  0xe7   : > { %v385_v21 = vadd.f32 %v384_v19, %v383_v18 }
  0xe8   : > { %v394_v23 = vpop.xlane.xlu0 %393 }
  0xe9   : > { %v386_v24 = vrot.slane %v385_v21, 2  ;;  %v395_v26 = vrot.slane %v394_v23, 4 }
  0xeb   : > { %v396_v27 = vadd.f32 %v395_v26, %v394_v23  ;;  %v387_v28 = vadd.f32 %v386_v24, %v385_v21 }
  0xec   : > { %v427_v29 = vpop.xlane.xlu0 %426 }
  0xed   : > { %v397_v32 = vrot.slane %v396_v27, 2  ;;  %v428_v33 = vrot.slane %v427_v29, 4  ;;  %v388_v34 = vrot.slane %v387_v28, 1 }
  0xef   : > { %v429_v35 = vadd.f32 %v428_v33, %v427_v29  ;;  %v389_v36 = vadd.f32 %v388_v34, %v387_v28  ;;  %v398_v37 = vadd.f32 %v397_v32, %v396_v27 }
  0xf1   : > { %v430_v39 = vrot.slane %v429_v35, 2  ;;  %584 = vpush %v389_v36  ;;  %v399_v40 = vrot.slane %v398_v37, 1 }
  0xf3   : > { %v431_v42 = vadd.f32 %v430_v39, %v429_v35  ;;  %v400_v43 = vadd.f32 %v399_v40, %v398_v37 }
  0xf5   : > { %586 = vpush %v400_v43  ;;  %v432_v46 = vrot.slane %v431_v42, 1 }
  0xf6   : > { %588 = vpush %v411_v44 }
  0xf7   : > { %590 = vpush %v422_v45  ;;  %v433_v47 = vadd.f32 %v432_v46, %v431_v42 }
  0xf9   : > { %592 = vpush %v433_v47 }
 0x122   : > { %s585_s24 = spop %584 }
 0x123   : > { %v438_v50 = vstv %s585_s24 }
 0x124   : > { %v439_v52 = vsel %vm437_vm4, %v438_v50, 0.0 }
 0x126   : > { %s587_s25 = spop %586 }
 0x127   : > { %v441_v51 = vstv %s587_s25  ;;  %s589_s27 = spop %588 }
 0x128   : > { %v442_v53 = vsel %vm440_vm5, %v441_v51, 0.0  ;;  %v445_v54 = vstv %s589_s27  ;;  %s591_s28 = spop %590 }
 0x129   : > { %v443_v55 = vadd.f32 %v442_v53, %v439_v52  ;;  %v449_v56 = vstv %s591_s28  ;;  %v446_v57 = vsel %vm444_vm6, %v445_v54, 0.0 }
 0x12a   : > { %s593_s29 = spop %592  ;;  %v450_v60 = vsel %vm448_vm7, %v449_v56, 0.0 }
 0x12b   : > { %v447_v58 = vadd.f32 %v446_v57, %v443_v55  ;;  %v453_v59 = vstv %s593_s29 }
 0x12c   : > { %v454_v62 = vsel %vm452_vm8, %v453_v59, 0.0 }
 0x12d   : > { %v451_v61 = vadd.f32 %v450_v60, %v447_v58 }
 0x12f   : > { %v455_v63 = vadd.f32 %v454_v62, %v451_v61 }
 0x131   : > { %456 = vst [vmem:[%s257_s3] sm:$0xff] %v455_v63 }
 0x132   : > { %671 = shalt.err (!%p668_p7)
}
 0x133   : > { %s672_s21 = scalar_lea.hbm %s469_s7, 128  ;;  %s676_s25 = scalar_lea.hbm %s899_s2, 256 }
 0x134   : > { %p673_p8 = scmp.ne.s32.totalorder %s469_s7, %s672_s21  ;;  %p677_p13 = scmp.lt.s32.totalorder %s469_s7, %s899_s2 }
 0x135   : > { %p678_p0 = scmp.lt.s32.totalorder %s676_s25, %s672_s21 }
 0x136   : > { %p674_p11 = pnand %p673_p8, %p796_p5 }
 0x137   : > { %p679_p1 = por %p678_p0, %p677_p13 }
 0x138   : > { %p675_p12 = pneg %p674_p11 }
 0x13a   : > { %p680_p10 = pnand %p679_p1, %p675_p12 }
 0x13c   : > { %683 = shalt.err (!%p680_p10)
}
 0x13d   : > { %594 = dma.vmem_to_hbm [thread:$0]  (%p796_p5), %s472_s4, 128, %s469_s7, %s458_s8  }
 0x13e PF: > { %s483_s28 = sand.u32 1, %s714_s9   ;;  %p904_p2 = scmp.ge.s32.totalorder %s734_s14, 2 }
 0x13f   : > { %s484_s29 = scalar_lea.sflag [#allocation6], %s483_s28 }
 0x140   : > { %p597_p3 = pnand %p904_p2, %p807_p9 }
 0x142   : > { %p598_p4 = pneg %p597_p3 }
 0x144   : > { %709 = dma.done.wait (%p598_p4), %s484_s29, 128  }
 0x145   : > { %711 = vsyncadd (%p598_p4), %s484_s29, 4294967168  ;;  %s15_s14 = sadd.s32 1, %s734_s14   ;;  %s905_s9 = smov %s718_s10 }
 0x146   : > { %p12_p6 = scmp.ge.s32.totalorder %s15_s14, 4   ;;  %s906_s10 = smov %s722_s11 }
 0x147   : > { %s907_s11 = smov %s805_s22  ;;  %s908_s12 = smov %s730_s13 }
 0x148   : > { %s909_s13 = smov %s911_s17  ;;  %14 = sbr.rel (!%p12_p6) target bundleno = 4 (0x4), region = 164 }
 0x14d   :  { %489 = vsyncpa [#allocation6], 1 }
 0x14e   :  { %491 = vsyncpa [#allocation6 + $0x1], 1 }

</bundles_post_ra>
